<compile_context>
chip_gen: v7x
topology: tpu7x:2x2x1
jax: 0.10.0
libtpu: 0.0.40
codegen_flags: <defaults>
</compile_context>

<pallas_src>
import jax
import jax.numpy as jnp
import numpy as np
from jax import lax
from jax.experimental import pallas as pl
from jax.experimental.pallas import tpu as pltpu


def _vmem_limit_bytes():
    # ~half of physical VMEM, clamped to [32 MiB, 64 MiB]:
    #   v5e/v6e (128 MiB physical) -> 64 MiB, v7x (64 MiB physical) -> 32 MiB.
    try:
        cap = pltpu.get_tpu_info().vmem_capacity_bytes
    except Exception:
        return 32 * 1024 * 1024
    return int(min(64 * 1024 * 1024, max(32 * 1024 * 1024, cap // 2)))


# ----------------------------- projection ---------------------------------- #

def _proj_kernel(x_ref, t2_ref, m_ref):
    # One fused, lane-dense MXU matmul: (TB, I) @ (I, J*K) -> (TB, J*K).
    m_ref[...] = jnp.dot(x_ref[...], t2_ref[...],
                         preferred_element_type=jnp.float32)


def _project(x, t2):
    """M = x @ t2, computed once (row-tiled)."""
    B, I = x.shape
    JK = t2.shape[1]
    tile_b = B
    for t in (256, 128, 64, 32, 16, 8):
        if B % t == 0:
            tile_b = t
            break
    return pl.pallas_call(
        _proj_kernel,
        out_shape=jax.ShapeDtypeStruct((B, JK), jnp.float32),
        grid=(B // tile_b,),
        in_specs=[
            pl.BlockSpec((tile_b, I), lambda i: (i, 0)),
            # Constant block index: kept resident, re-fetch skipped between steps.
            pl.BlockSpec((I, JK), lambda i: (0, 0)),
        ],
        out_specs=pl.BlockSpec((tile_b, JK), lambda i: (i, 0)),
        compiler_params=pltpu.CompilerParams(
            dimension_semantics=("parallel",),
            vmem_limit_bytes=_vmem_limit_bytes(),
        ),
    )(x, t2)


# ------------------------- pairwise feature kernel ------------------------- #

def _pairwise_kernel(mr_ref, mc_ref, sqr_ref, sqc_ref, feats_ref):
    # mr_ref:    (J, TB, K)  row tile of M (batch-j leading, flash-style)
    # mc_ref:    (J, TC, K)  column tile of M
    # sqr_ref:   (J, TB, 1)  precomputed ||M[a,j,:]||^2 for the row tile
    # sqc_ref:   (J, 1, TC)  precomputed ||M[b,j,:]||^2 for the column tile
    # feats_ref: (J, TB, 1)  accumulator over column tiles (resident block)
    col_step = pl.program_id(1)

    @pl.when(col_step == 0)
    def _init():
        feats_ref[...] = jnp.zeros_like(feats_ref)

    mr = mr_ref[...]
    mc = mc_ref[...]
    J, TB, _ = mr.shape
    TC = mc.shape[1]

    # Gram cross term, batched over j, on the MXU (one batched matmul instead
    # of J unrolled 8-lane slices): g[j,a,b] = sum_k mr[j,a,k] * mc[j,b,k].
    g = jnp.einsum('jak,jbk->jab', mr, mc,
                   preferred_element_type=jnp.float32)          # (J, TB, TC)

    # dist^2 from precomputed squared norms; clamp at 0 before the sqrt.
    d2 = sqr_ref[...] + sqc_ref[...] - 2.0 * g                  # (J, TB, TC)
    d = jnp.sqrt(jnp.maximum(d2, 0.0))
    cvals = jnp.exp(-jnp.minimum(d, 10.0))                      # clamp(max=10)

    # Exact self pair (global row idx == global col idx) -> c == 1; the Gram
    # cancellation would otherwise miss it by ~sqrt(eps * ||M||^2).
    rows = lax.broadcasted_iota(jnp.int32, (J, TB, TC), 1) + pl.program_id(0) * TB
    cols = lax.broadcasted_iota(jnp.int32, (J, TB, TC), 2) + col_step * TC
    cvals = jnp.where(rows == cols, 1.0, cvals)

    # Partial minibatch features for this column tile, accumulated in place.
    feats_ref[...] += jnp.sum(cvals, axis=2, keepdims=True)     # (J, TB, 1)


def _pick_row_tile(B):
    # The row tile only ever sits on sublane axes -> any multiple of 8 (or B).
    # Prefer >= 2 row tiles so the "parallel" axis can shard across v7x's 2 TCs.
    for t in (128, 64, 32, 16, 8):
        if B % t == 0 and B // t >= 2:
            return t
    return B


def _pick_col_tile(B):
    # sqc's block (J, 1, TC) puts the col tile on the lane axis -> TC must be a
    # multiple of 128, or the full batch.
    for t in (256, 128):
        if B % t == 0:
            return t
    return B


def _pairwise_features(m3, sq):
    """feats_t[j, a] = sum_b exp(-min(||M[a,j,:] - M[b,j,:]||, 10))."""
    J, B, K = m3.shape
    tb = _pick_row_tile(B)
    tc = _pick_col_tile(B)
    sq_r = sq[:, :, None]                                       # (J, B, 1)
    sq_c = sq[:, None, :]                                       # (J, 1, B)

    feats_t = pl.pallas_call(
        _pairwise_kernel,
        out_shape=jax.ShapeDtypeStruct((J, B, 1), jnp.float32),
        grid=(B // tb, B // tc),
        in_specs=[
            pl.BlockSpec((J, tb, K), lambda i, c: (0, i, 0)),   # M row tile
            pl.BlockSpec((J, tc, K), lambda i, c: (0, c, 0)),   # M col tile
            pl.BlockSpec((J, tb, 1), lambda i, c: (0, i, 0)),   # sq row tile
            pl.BlockSpec((J, 1, tc), lambda i, c: (0, 0, c)),   # sq col tile
        ],
        # Constant block index along the column axis -> resident accumulator.
        out_specs=pl.BlockSpec((J, tb, 1), lambda i, c: (0, i, 0)),
        compiler_params=pltpu.CompilerParams(
            # Row axis megacore-parallel; reduction (column) axis last, arbitrary.
            dimension_semantics=("parallel", "arbitrary"),
            vmem_limit_bytes=_vmem_limit_bytes(),
        ),
    )(m3, m3, sq_r, sq_c)
    return feats_t[:, :, 0]                                     # (J, B)


# --------------------------------- wrapper ---------------------------------- #

def minibatch_discrimination(x, T):
    """x: (B, in_features); T: (in_features, out_features, num_kernels)."""
    B, I = x.shape
    I2, J, K = T.shape
    assert I == I2
    xf = x.astype(jnp.float32)
    t2 = T.reshape(I, J * K).astype(jnp.float32)   # contiguous view, no transpose

    # Projection computed ONCE (Pallas MXU matmul), not per pairwise grid step.
    m = _project(xf, t2)                           # (B, J*K) f32

    # One-off layout plumbing + squared norms (plain XLA, outside the kernels).
    m3 = m.reshape(B, J, K).transpose(1, 0, 2)     # (J, B, K): j is the batch dim
    sq = jnp.sum(m3 * m3, axis=2)                  # (J, B), computed once

    feats_t = _pairwise_features(m3, sq)           # (J, B)

    # x pass-through stays outside the kernel: no HBM->VMEM->HBM copy of x and
    # no sub-128-lane (I+J) output block.
    return jnp.concatenate([x, feats_t.T.astype(x.dtype)], axis=1)


def reference(x, T):
    M = jnp.einsum('bi,ijk->bjk', x, T)
    diff = M[None, :, :, :] - M[:, None, :, :]
    dist = jnp.sqrt(jnp.sum(diff * diff, axis=3))
    c = jnp.exp(-jnp.minimum(dist, 10.0))
    feats = jnp.sum(c, axis=1)
    return jnp.concatenate([x, feats], axis=1)


if __name__ == "__main__":
    B, in_features, out_features, num_kernels = 8, 32, 16, 8

    key = jax.random.PRNGKey(0)
    kx, kt = jax.random.split(key)
    x = jax.random.normal(kx, (B, in_features), dtype=jnp.float32)
    # Deterministic parameter init (stands in for torch.randn in __init__).
    T = jax.random.normal(kt, (in_features, out_features, num_kernels),
                          dtype=jnp.float32)

    out = jax.block_until_ready(jax.jit(minibatch_discrimination)(x, T))
    ref = jax.block_until_ready(reference(x, T))

    assert out.shape == (B, in_features + out_features)
    np.testing.assert_allclose(np.asarray(out), np.asarray(ref),
                               rtol=1e-4, atol=1e-4)
    print("KERNEL_OK")
</pallas_src>

<mosaic_0001>
module attributes {stable_mosaic.version = 11 : i64} {
  func.func @_proj_kernel(%arg0: i32, %arg1: memref<8x32xf32, #tpu.memory_space<vmem>>, %arg2: memref<32x128xf32, #tpu.memory_space<vmem>>, %arg3: memref<8x128xf32, #tpu.memory_space<vmem>>) attributes {dimension_semantics = [#tpu.dimension_semantics<parallel>], iteration_bounds = array<i64: 1>, scalar_prefetch = 0 : i64, scratch_operands = 0 : i64, tpu.core_type = #tpu.core_type<tc>, window_params = [{transform_indices = @transform_0, window_bounds = array<i64: 8, 32>}, {pipeline_mode = #tpu.pipeline_mode<synchronous>, transform_indices = @transform_1, window_bounds = array<i64: 32, 128>}, {transform_indices = @transform_2, window_bounds = array<i64: 8, 128>}]} {
    %c0 = arith.constant 0 : index
    %c0_0 = arith.constant 0 : index
    %0 = vector.load %arg1[%c0, %c0_0] : memref<8x32xf32, #tpu.memory_space<vmem>>, vector<8x32xf32>
    %c0_1 = arith.constant 0 : index
    %c0_2 = arith.constant 0 : index
    %1 = vector.load %arg2[%c0_1, %c0_2] : memref<32x128xf32, #tpu.memory_space<vmem>>, vector<32x128xf32>
    %cst = arith.constant dense<0.000000e+00> : vector<8x128xf32>
    %2 = tpu.matmul %0, %1, %cst {dimension_numbers = #tpu.dot_dimension_numbers<[1], [0], [0], [1], [0, 0, 1, 1], [], []>} : vector<8x32xf32>, vector<32x128xf32>, vector<8x128xf32> -> vector<8x128xf32>
    %c0_3 = arith.constant 0 : index
    %c0_4 = arith.constant 0 : index
    %3 = vector.load %arg3[%c0_3, %c0_4] : memref<8x128xf32, #tpu.memory_space<vmem>>, vector<8x128xf32>
    tpu.vector_store %arg3[%c0_3, %c0_4], %2 {strides = array<i32>} : memref<8x128xf32, #tpu.memory_space<vmem>>, vector<8x128xf32>,
    return
  }
  func.func @transform_0(%arg0: i32) -> (i32, i32) {
    %c0_i32 = arith.constant 0 : i32
    %c0_i32_0 = arith.constant 0 : i32
    return %arg0, %c0_i32 : i32, i32
  }
  func.func @transform_1(%arg0: i32) -> (i32, i32) {
    %c0_i32 = arith.constant 0 : i32
    %c0_i32_0 = arith.constant 0 : i32
    %c0_i32_1 = arith.constant 0 : i32
    return %c0_i32, %c0_i32_0 : i32, i32
  }
  func.func @transform_2(%arg0: i32) -> (i32, i32) {
    %c0_i32 = arith.constant 0 : i32
    %c0_i32_0 = arith.constant 0 : i32
    return %arg0, %c0_i32 : i32, i32
  }
}

module attributes {stable_mosaic.version = 11 : i64} {
  func.func @_pairwise_kernel(%arg0: i32, %arg1: i32, %arg2: memref<16x8x8xf32, #tpu.memory_space<vmem>>, %arg3: memref<16x8x8xf32, #tpu.memory_space<vmem>>, %arg4: memref<16x8x1xf32, #tpu.memory_space<vmem>>, %arg5: memref<16x1x8xf32, #tpu.memory_space<vmem>>, %arg6: memref<16x8x1xf32, #tpu.memory_space<vmem>>) attributes {dimension_semantics = [#tpu.dimension_semantics<parallel>, #tpu.dimension_semantics<arbitrary>], iteration_bounds = array<i64: 1, 1>, scalar_prefetch = 0 : i64, scratch_operands = 0 : i64, tpu.core_type = #tpu.core_type<tc>, window_params = [{transform_indices = @transform_0, window_bounds = array<i64: 16, 8, 8>}, {transform_indices = @transform_1, window_bounds = array<i64: 16, 8, 8>}, {transform_indices = @transform_2, window_bounds = array<i64: 16, 8, 1>}, {transform_indices = @transform_3, window_bounds = array<i64: 16, 1, 8>}, {transform_indices = @transform_4, window_bounds = array<i64: 16, 8, 1>}]} {
    %c0_i32 = arith.constant 0 : i32
    %0 = arith.cmpi eq, %arg1, %c0_i32 : i32
    %1 = arith.extui %0 : i1 to i32
    %c0_i32_0 = arith.constant 0 : i32
    %2 = arith.cmpi ne, %1, %c0_i32_0 : i32
    scf.if %2 {
      %cst_25 = arith.constant 0.000000e+00 : f32
      %38 = vector.broadcast %cst_25 : f32 to vector<16x8x1xf32>
      %c0_26 = arith.constant 0 : index
      %c0_27 = arith.constant 0 : index
      %c0_28 = arith.constant 0 : index
      %39 = vector.load %arg6[%c0_26, %c0_27, %c0_28] : memref<16x8x1xf32, #tpu.memory_space<vmem>>, vector<16x8x1xf32>
      tpu.vector_store %arg6[%c0_26, %c0_27, %c0_28], %38 {strides = array<i32>} : memref<16x8x1xf32, #tpu.memory_space<vmem>>, vector<16x8x1xf32>,
    } else {
    }
    %c0 = arith.constant 0 : index
    %c0_1 = arith.constant 0 : index
    %c0_2 = arith.constant 0 : index
    %3 = vector.load %arg2[%c0, %c0_1, %c0_2] : memref<16x8x8xf32, #tpu.memory_space<vmem>>, vector<16x8x8xf32>
    %c0_3 = arith.constant 0 : index
    %c0_4 = arith.constant 0 : index
    %c0_5 = arith.constant 0 : index
    %4 = vector.load %arg3[%c0_3, %c0_4, %c0_5] : memref<16x8x8xf32, #tpu.memory_space<vmem>>, vector<16x8x8xf32>
    "tpu.trace_start"() <{level = 10 : i32, message = "jak,jbk->jab"}> : () -> ()
    %cst = arith.constant dense<0.000000e+00> : vector<16x8x8xf32>
    %5 = tpu.matmul %3, %4, %cst {dimension_numbers = #tpu.dot_dimension_numbers<[2], [2], [1], [1], [0, 0, 0, 1, 1, 1], [0], [0]>} : vector<16x8x8xf32>, vector<16x8x8xf32>, vector<16x8x8xf32> -> vector<16x8x8xf32>
    "tpu.trace_stop"() : () -> ()
    %c0_6 = arith.constant 0 : index
    %c0_7 = arith.constant 0 : index
    %c0_8 = arith.constant 0 : index
    %6 = vector.load %arg4[%c0_6, %c0_7, %c0_8] : memref<16x8x1xf32, #tpu.memory_space<vmem>>, vector<16x8x1xf32>
    %c0_9 = arith.constant 0 : index
    %c0_10 = arith.constant 0 : index
    %c0_11 = arith.constant 0 : index
    %7 = vector.load %arg5[%c0_9, %c0_10, %c0_11] : memref<16x1x8xf32, #tpu.memory_space<vmem>>, vector<16x1x8xf32>
    %8 = vector.broadcast %6 : vector<16x8x1xf32> to vector<16x8x8xf32>
    %9 = vector.broadcast %7 : vector<16x1x8xf32> to vector<16x8x8xf32>
    %10 = arith.addf %8, %9 : vector<16x8x8xf32>
    %cst_12 = arith.constant 2.000000e+00 : f32
    %11 = vector.broadcast %cst_12 : f32 to vector<16x8x8xf32>
    %12 = arith.mulf %11, %5 : vector<16x8x8xf32>
    %13 = arith.subf %10, %12 : vector<16x8x8xf32>
    %cst_13 = arith.constant 0.000000e+00 : f32
    %14 = vector.broadcast %cst_13 : f32 to vector<16x8x8xf32>
    %15 = arith.maximumf %13, %14 : vector<16x8x8xf32>
    %16 = math.sqrt %15 : vector<16x8x8xf32>
    %cst_14 = arith.constant 1.000000e+01 : f32
    %17 = vector.broadcast %cst_14 : f32 to vector<16x8x8xf32>
    %18 = arith.minimumf %16, %17 : vector<16x8x8xf32>
    %cst_15 = arith.constant 0.000000e+00 : f32
    %19 = vector.broadcast %cst_15 : f32 to vector<16x8x8xf32>
    %20 = arith.subf %19, %18 : vector<16x8x8xf32>
    %21 = math.exp %20 : vector<16x8x8xf32>
    %22 = tpu.iota {dimensions = array<i32: 1>} : vector<16x8x8xi32>
    %c8_i32 = arith.constant 8 : i32
    %23 = arith.muli %arg0, %c8_i32 : i32
    %24 = vector.broadcast %23 : i32 to vector<16x8x8xi32>
    %25 = arith.addi %22, %24 : vector<16x8x8xi32>
    %26 = tpu.iota {dimensions = array<i32: 2>} : vector<16x8x8xi32>
    %c8_i32_16 = arith.constant 8 : i32
    %27 = arith.muli %arg1, %c8_i32_16 : i32
    %28 = vector.broadcast %27 : i32 to vector<16x8x8xi32>
    %29 = arith.addi %26, %28 : vector<16x8x8xi32>
    %30 = arith.cmpi eq, %25, %29 : vector<16x8x8xi32>
    %cst_17 = arith.constant 1.000000e+00 : f32
    %31 = vector.broadcast %cst_17 : f32 to vector<16x8x8xf32>
    %32 = arith.select %30, %31, %21 : vector<16x8x8xi1>, vector<16x8x8xf32>
    %c0_18 = arith.constant 0 : index
    %c0_19 = arith.constant 0 : index
    %c0_20 = arith.constant 0 : index
    %33 = vector.load %arg6[%c0_18, %c0_19, %c0_20] : memref<16x8x1xf32, #tpu.memory_space<vmem>>, vector<16x8x1xf32>
    %cst_21 = arith.constant dense<0.000000e+00> : vector<16x8xf32>
    %34 = vector.multi_reduction <add>, %32, %cst_21 [2] : vector<16x8x8xf32> to vector<16x8xf32>
    %35 = vector.shape_cast %34 : vector<16x8xf32> to vector<16x8x1xf32>
    %36 = arith.addf %33, %35 : vector<16x8x1xf32>
    %c0_22 = arith.constant 0 : index
    %c0_23 = arith.constant 0 : index
    %c0_24 = arith.constant 0 : index
    %37 = vector.load %arg6[%c0_22, %c0_23, %c0_24] : memref<16x8x1xf32, #tpu.memory_space<vmem>>, vector<16x8x1xf32>
    tpu.vector_store %arg6[%c0_22, %c0_23, %c0_24], %36 {strides = array<i32>} : memref<16x8x1xf32, #tpu.memory_space<vmem>>, vector<16x8x1xf32>,
    return
  }
  func.func @transform_0(%arg0: i32, %arg1: i32) -> (i32, i32, i32) {
    %c0_i32 = arith.constant 0 : i32
    %c0_i32_0 = arith.constant 0 : i32
    %c0_i32_1 = arith.constant 0 : i32
    return %c0_i32, %arg0, %c0_i32_0 : i32, i32, i32
  }
  func.func @transform_1(%arg0: i32, %arg1: i32) -> (i32, i32, i32) {
    %c0_i32 = arith.constant 0 : i32
    %c0_i32_0 = arith.constant 0 : i32
    %c0_i32_1 = arith.constant 0 : i32
    return %c0_i32, %arg1, %c0_i32_0 : i32, i32, i32
  }
  func.func @transform_2(%arg0: i32, %arg1: i32) -> (i32, i32, i32) {
    %c0_i32 = arith.constant 0 : i32
    %c0_i32_0 = arith.constant 0 : i32
    %c0_i32_1 = arith.constant 0 : i32
    return %c0_i32, %arg0, %c0_i32_0 : i32, i32, i32
  }
  func.func @transform_3(%arg0: i32, %arg1: i32) -> (i32, i32, i32) {
    %c0_i32 = arith.constant 0 : i32
    %c0_i32_0 = arith.constant 0 : i32
    %c0_i32_1 = arith.constant 0 : i32
    return %c0_i32, %c0_i32_0, %arg1 : i32, i32, i32
  }
  func.func @transform_4(%arg0: i32, %arg1: i32) -> (i32, i32, i32) {
    %c0_i32 = arith.constant 0 : i32
    %c0_i32_0 = arith.constant 0 : i32
    %c0_i32_1 = arith.constant 0 : i32
    return %c0_i32, %arg0, %c0_i32_0 : i32, i32, i32
  }
}

</mosaic_0001>

<bundles_post_ra>
// kernel: minibatch_discrimination.2
= control target key start
LH: loop header
LB: loop body
LE: loop exit
PB: predicated region body
PF: predicated region fallthrough
CT: control target
= control target key end

     0   :  { %v121_v0 = vmov 0.0|0.0   ;;  %vm122_vm0 = vmmov 0   ;;  %v123_v4 = vmov 0.0   ;;  %vm16_vm1 = vcmask 261120   ;;  %s157_s1 = inlined_call_operand.vmem [shape: f32[32,128], index: 1, kind: input, shape index: {}]   ;;  %s158_s0 = inlined_call_operand.vmem [shape: f32[8,32], index: 0, kind: input, shape index: {}]   ;;  %s159_s2 = inlined_call_operand.vmem [shape: f32[8,128], index: 2, kind: output, shape index: {}]  }
   0x1   :  { %112 = vmatprep.subr.bf16.mxu0 %v121_v0  ;;  %v12_v1 = vld [vmem:[%s157_s1] sm:$0xff]  ;;  %v13_v2 = vld [vmem:[%s157_s1 + $0x8] sm:$0xff]  ;;  %v14_v3 = vld [vmem:[%s157_s1 + $0x10] sm:$0xff]  ;;  %109 = vmatprep.mubr.msk.f32.mxu0 %vm122_vm0, %v123_v4 }
   0x2   :  { %v113_v5 = vpack.c.bf16 %v13_v2, %v12_v1  ;;  %v15_v6 = vld [vmem:[%s157_s1 + $0x18] sm:$0xff]  ;;  %v11_v8 = vld [vmem:[%s158_s0] sm:$0xff] }
   0x3   :  { %v116_v7 = vpack.c.bf16 %v15_v6, %v14_v3 }
   0x4   :  { %114 = vmatpush3.bf16.msra.mxu0 %v113_v5 }
   0x5   :  { %115 = vmatprep.subr.bf16.mxu0 %v121_v0 }
   0x8   :  { %117 = vmatpush3.bf16.msra.mxu0 %v116_v7 }
   0xb   :  { %110 = vmatmul.mubr.msk.f32.vlgmr.msra.gmra.mrb[0].mxu0 %vm16_vm1, %v11_v8 }
  0xde   :  { %v86_v9 = vpop.f32.mrb[0].mxu0 }
  0xdf   :  { %90 = vst [vmem:[%s159_s2] sm:$0xff] %v86_v9  ;;  %v111_v10 = vpop.f32.mrb[1].mxu0 }

// kernel: minibatch_discrimination.3
= control target key start
LH: loop header
LB: loop body
LE: loop exit
PB: predicated region body
PF: predicated region fallthrough
CT: control target
= control target key end

     0   :  { %vm70_vm0 = vcmask 64512   ;;  %v2092_v0 = vmov 0.0   ;;  %vm2093_vm1 = vmmov 0   ;;  %v2094_v35 = vmov 0   ;;  %s2840_s1 = inlined_call_operand.vmem [shape: f32[16,8,8], index: 1, kind: input, shape index: {}, may-alias: {0,1}]   ;;  %s2841_s0 = inlined_call_operand.vmem [shape: f32[16,8,8], index: 0, kind: input, shape index: {}, may-alias: {0,1}]   ;;  %s2842_s2 = inlined_call_operand.vmem [shape: f32[16,8,1], index: 2, kind: input, shape index: {}]   ;;  %s2843_s4 = inlined_call_operand.vmem [shape: f32[16,8,1], index: 4, kind: output, shape index: {}]   ;;  %s2844_s3 = inlined_call_operand.vmem [shape: f32[16,1,8], index: 3, kind: input, shape index: {}]  }
   0x1   :  { %1943 = vmatprep.subr.mxu0 %v2092_v0  ;;  %1948 = vmatprep.subr.mxu1 %v2092_v0  ;;  %v54_v1 = vld [vmem:[%s2840_s1] sm:$0xff]  ;;  %v55_v2 = vld [vmem:[%s2840_s1 + $0x8] sm:$0xff]  ;;  %v56_v5 = vld [vmem:[%s2840_s1 + $0x10] sm:$0xff]  ;;  %vm21_vm2 = vcmask 7168  }
   0x2   :  { %1944 = vmatpush3.xpose.msk.msra.mxu0 %vm70_vm0, %v54_v1  ;;  %1949 = vmatpush3.xpose.msk.msra.mxu1 %vm70_vm0, %v55_v2  ;;  %v38_v3 = vld [vmem:[%s2841_s0] sm:$0xff]  ;;  %v39_v4 = vld [vmem:[%s2841_s0 + $0x8] sm:$0xff]  ;;  %v57_v6 = vld [vmem:[%s2840_s1 + $0x18] sm:$0xff]  ;;  %23 = vst.msk [vmem:[%s2843_s4 + $0x8] sm:$0xff] %vm21_vm2, %v2092_v0 }
   0x3   :  { %1945 = vmatprep.mubr.msk.f32.mxu0 %vm2093_vm1, %v2092_v0  ;;  %1950 = vmatprep.mubr.msk.f32.mxu1 %vm2093_vm1, %v2092_v0  ;;  %v40_v7 = vld [vmem:[%s2841_s0 + $0x10] sm:$0xff]  ;;  %v41_v8 = vld [vmem:[%s2841_s0 + $0x18] sm:$0xff]  ;;  %v58_v9 = vld [vmem:[%s2840_s1 + $0x20] sm:$0xff]  ;;  %22 = vst.msk [vmem:[%s2843_s4] sm:$0xff] %vm21_vm2, %v2092_v0 }
   0x4   :  { %1953 = vmatprep.subr.mxu0 %v2092_v0  ;;  %1958 = vmatprep.subr.mxu1 %v2092_v0  ;;  %v59_v10 = vld [vmem:[%s2840_s1 + $0x28] sm:$0xff]  ;;  %v42_v11 = vld [vmem:[%s2841_s0 + $0x20] sm:$0xff]  ;;  %v60_v13 = vld [vmem:[%s2840_s1 + $0x30] sm:$0xff]  ;;  %24 = vst.msk [vmem:[%s2843_s4 + $0x10] sm:$0xff] %vm21_vm2, %v2092_v0 }
   0x5   :  { %1946 = vmatmul.mubr.msk.f32.vlgmr.msra.gmra.mrb[0].mxu0 %vm70_vm0, %v38_v3  ;;  %1951 = vmatmul.mubr.msk.f32.vlgmr.msra.gmra.mrb[0].mxu1 %vm70_vm0, %v39_v4  ;;  %v43_v12 = vld [vmem:[%s2841_s0 + $0x28] sm:$0xff]  ;;  %v61_v14 = vld [vmem:[%s2840_s1 + $0x38] sm:$0xff]  ;;  %v44_v15 = vld [vmem:[%s2841_s0 + $0x30] sm:$0xff]  ;;  %25 = vst.msk [vmem:[%s2843_s4 + $0x18] sm:$0xff] %vm21_vm2, %v2092_v0 }
   0x6   :  { %1954 = vmatpush3.xpose.msk.msra.mxu0 %vm70_vm0, %v56_v5  ;;  %1959 = vmatpush3.xpose.msk.msra.mxu1 %vm70_vm0, %v57_v6  ;;  %v45_v16 = vld [vmem:[%s2841_s0 + $0x38] sm:$0xff]  ;;  %v62_v17 = vld [vmem:[%s2840_s1 + $0x40] sm:$0xff]  ;;  %v63_v18 = vld [vmem:[%s2840_s1 + $0x48] sm:$0xff]  ;;  %26 = vst.msk [vmem:[%s2843_s4 + $0x20] sm:$0xff] %vm21_vm2, %v2092_v0 }
   0x7   :  { %1955 = vmatprep.mubr.msk.f32.mxu0 %vm2093_vm1, %v2092_v0  ;;  %1960 = vmatprep.mubr.msk.f32.mxu1 %vm2093_vm1, %v2092_v0  ;;  %v46_v19 = vld [vmem:[%s2841_s0 + $0x40] sm:$0xff]  ;;  %v47_v20 = vld [vmem:[%s2841_s0 + $0x48] sm:$0xff]  ;;  %v64_v21 = vld [vmem:[%s2840_s1 + $0x50] sm:$0xff]  ;;  %27 = vst.msk [vmem:[%s2843_s4 + $0x28] sm:$0xff] %vm21_vm2, %v2092_v0 }
   0x8   :  { %1963 = vmatprep.subr.mxu0 %v2092_v0  ;;  %1968 = vmatprep.subr.mxu1 %v2092_v0  ;;  %v65_v22 = vld [vmem:[%s2840_s1 + $0x58] sm:$0xff]  ;;  %v48_v23 = vld [vmem:[%s2841_s0 + $0x50] sm:$0xff]  ;;  %v66_v25 = vld [vmem:[%s2840_s1 + $0x60] sm:$0xff]  ;;  %28 = vst.msk [vmem:[%s2843_s4 + $0x30] sm:$0xff] %vm21_vm2, %v2092_v0 }
   0x9   :  { %1956 = vmatmul.mubr.msk.f32.vlgmr.msra.gmra.mrb[2].mxu0 %vm70_vm0, %v40_v7  ;;  %1961 = vmatmul.mubr.msk.f32.vlgmr.msra.gmra.mrb[2].mxu1 %vm70_vm0, %v41_v8  ;;  %v49_v24 = vld [vmem:[%s2841_s0 + $0x58] sm:$0xff]  ;;  %v67_v26 = vld [vmem:[%s2840_s1 + $0x68] sm:$0xff]  ;;  %v50_v27 = vld [vmem:[%s2841_s0 + $0x60] sm:$0xff]  ;;  %29 = vst.msk [vmem:[%s2843_s4 + $0x38] sm:$0xff] %vm21_vm2, %v2092_v0 }
   0xa   :  { %1964 = vmatpush3.xpose.msk.msra.mxu0 %vm70_vm0, %v58_v9  ;;  %1969 = vmatpush3.xpose.msk.msra.mxu1 %vm70_vm0, %v59_v10  ;;  %v51_v28 = vld [vmem:[%s2841_s0 + $0x68] sm:$0xff]  ;;  %v68_v29 = vld [vmem:[%s2840_s1 + $0x70] sm:$0xff]  ;;  %v69_v30 = vld [vmem:[%s2840_s1 + $0x78] sm:$0xff]  ;;  %30 = vst.msk [vmem:[%s2843_s4 + $0x40] sm:$0xff] %vm21_vm2, %v2092_v0 }
   0xb   :  { %1965 = vmatprep.mubr.msk.f32.mxu0 %vm2093_vm1, %v2092_v0  ;;  %1970 = vmatprep.mubr.msk.f32.mxu1 %vm2093_vm1, %v2092_v0  ;;  %v52_v31 = vld [vmem:[%s2841_s0 + $0x70] sm:$0xff]  ;;  %v53_v32 = vld [vmem:[%s2841_s0 + $0x78] sm:$0xff]  ;;  %v1287_v33 = vld [vmem:[%s2842_s2] sm:$0xff]  ;;  %31 = vst.msk [vmem:[%s2843_s4 + $0x48] sm:$0xff] %vm21_vm2, %v2092_v0 }
   0xc   :  { %1973 = vmatprep.subr.mxu0 %v2092_v0  ;;  %1978 = vmatprep.subr.mxu1 %v2092_v0  ;;  %v1289_v34 = vld [vmem:[%s2842_s2 + $0x10] sm:$0xff]  ;;  %v1288_v36 = vld [vmem:[%s2842_s2 + $0x8] sm:$0xff]  ;;  %v1290_v37 = vld [vmem:[%s2842_s2 + $0x18] sm:$0xff]  ;;  %32 = vst.msk [vmem:[%s2843_s4 + $0x50] sm:$0xff] %vm21_vm2, %v2092_v0 }
   0xd   :  { %1966 = vmatmul.mubr.msk.f32.vlgmr.msra.gmra.mrb[4].mxu0 %vm70_vm0, %v42_v11  ;;  %1971 = vmatmul.mubr.msk.f32.vlgmr.msra.gmra.mrb[4].mxu1 %vm70_vm0, %v43_v12  ;;  %v1291_v38 = vld [vmem:[%s2842_s2 + $0x20] sm:$0xff]  ;;  %v1292_v39 = vld [vmem:[%s2842_s2 + $0x28] sm:$0xff]  ;;  %v1293_v40 = vld [vmem:[%s2842_s2 + $0x30] sm:$0xff]  ;;  %33 = vst.msk [vmem:[%s2843_s4 + $0x58] sm:$0xff] %vm21_vm2, %v2092_v0  ;;  %v1735_v11 = vlaneseq }
   0xe   :  { %1974 = vmatpush3.xpose.msk.msra.mxu0 %vm70_vm0, %v60_v13  ;;  %1979 = vmatpush3.xpose.msk.msra.mxu1 %vm70_vm0, %v61_v14  ;;  %v1294_v41 = vld [vmem:[%s2842_s2 + $0x38] sm:$0xff]  ;;  %v1295_v42 = vld [vmem:[%s2842_s2 + $0x40] sm:$0xff]  ;;  %v1296_v43 = vld [vmem:[%s2842_s2 + $0x48] sm:$0xff]  ;;  %34 = vst.msk [vmem:[%s2843_s4 + $0x60] sm:$0xff] %vm21_vm2, %v2092_v0 }
   0xf   :  { %1975 = vmatprep.mubr.msk.f32.mxu0 %vm2093_vm1, %v2092_v0  ;;  %1980 = vmatprep.mubr.msk.f32.mxu1 %vm2093_vm1, %v2092_v0  ;;  %v1297_v44 = vld [vmem:[%s2842_s2 + $0x50] sm:$0xff]  ;;  %v1298_v45 = vld [vmem:[%s2842_s2 + $0x58] sm:$0xff]  ;;  %v1299_v46 = vld [vmem:[%s2842_s2 + $0x60] sm:$0xff]  ;;  %35 = vst.msk [vmem:[%s2843_s4 + $0x68] sm:$0xff] %vm21_vm2, %v2092_v0 }
  0x10   :  { %1983 = vmatprep.subr.mxu0 %v2092_v0  ;;  %1988 = vmatprep.subr.mxu1 %v2092_v0  ;;  %v1300_v47 = vld [vmem:[%s2842_s2 + $0x68] sm:$0xff]  ;;  %v1301_v48 = vld [vmem:[%s2842_s2 + $0x70] sm:$0xff]  ;;  %v1302_v49 = vld [vmem:[%s2842_s2 + $0x78] sm:$0xff]  ;;  %36 = vst.msk [vmem:[%s2843_s4 + $0x70] sm:$0xff] %vm21_vm2, %v2092_v0 }
  0x11   :  { %1976 = vmatmul.mubr.msk.f32.vlgmr.msra.gmra.mrb[6].mxu0 %vm70_vm0, %v44_v15  ;;  %1981 = vmatmul.mubr.msk.f32.vlgmr.msra.gmra.mrb[6].mxu1 %vm70_vm0, %v45_v16  ;;  %37 = vst.msk [vmem:[%s2843_s4 + $0x78] sm:$0xff] %vm21_vm2, %v2092_v0  ;;  %v1895_v61 = vld [vmem:[%s2844_s3] ss:$0 sm:$0xff]  ;;  %v1896_v62 = vld [vmem:[%s2844_s3 + $0x1] ss:$0 sm:$0xff] }
  0x12   :  { %1984 = vmatpush3.xpose.msk.msra.mxu0 %vm70_vm0, %v62_v17  ;;  %1989 = vmatpush3.xpose.msk.msra.mxu1 %vm70_vm0, %v63_v18  ;;  %v1897_v3 = vld [vmem:[%s2844_s3 + $0x2] ss:$0 sm:$0xff]  ;;  %v1898_v4 = vld [vmem:[%s2844_s3 + $0x3] ss:$0 sm:$0xff]  ;;  %v1899_v17 = vld [vmem:[%s2844_s3 + $0x4] ss:$0 sm:$0xff] }
  0x13   :  { %1985 = vmatprep.mubr.msk.f32.mxu0 %vm2093_vm1, %v2092_v0  ;;  %1990 = vmatprep.mubr.msk.f32.mxu1 %vm2093_vm1, %v2092_v0  ;;  %v1900_v18 = vld [vmem:[%s2844_s3 + $0x5] ss:$0 sm:$0xff] }
  0x14   :  { %1993 = vmatprep.subr.mxu0 %v2092_v0  ;;  %1998 = vmatprep.subr.mxu1 %v2092_v0 }
  0x15   :  { %1986 = vmatmul.mubr.msk.f32.vlgmr.msra.gmra.mrb[8].mxu0 %vm70_vm0, %v46_v19  ;;  %1991 = vmatmul.mubr.msk.f32.vlgmr.msra.gmra.mrb[8].mxu1 %vm70_vm0, %v47_v20 }
  0x16   :  { %1994 = vmatpush3.xpose.msk.msra.mxu0 %vm70_vm0, %v64_v21  ;;  %1999 = vmatpush3.xpose.msk.msra.mxu1 %vm70_vm0, %v65_v22  ;;  %v1901_v21 = vld [vmem:[%s2844_s3 + $0x6] ss:$0 sm:$0xff]  ;;  %v1902_v22 = vld [vmem:[%s2844_s3 + $0x7] ss:$0 sm:$0xff] }
  0x17   :  { %1995 = vmatprep.mubr.msk.f32.mxu0 %vm2093_vm1, %v2092_v0  ;;  %2000 = vmatprep.mubr.msk.f32.mxu1 %vm2093_vm1, %v2092_v0 }
  0x18   :  { %2003 = vmatprep.subr.mxu0 %v2092_v0  ;;  %2008 = vmatprep.subr.mxu1 %v2092_v0 }
  0x19   :  { %1996 = vmatmul.mubr.msk.f32.vlgmr.msra.gmra.mrb[10].mxu0 %vm70_vm0, %v48_v23  ;;  %2001 = vmatmul.mubr.msk.f32.vlgmr.msra.gmra.mrb[10].mxu1 %vm70_vm0, %v49_v24 }
  0x1a   :  { %2004 = vmatpush3.xpose.msk.msra.mxu0 %vm70_vm0, %v66_v25  ;;  %2009 = vmatpush3.xpose.msk.msra.mxu1 %vm70_vm0, %v67_v26 }
  0x1b   :  { %2005 = vmatprep.mubr.msk.f32.mxu0 %vm2093_vm1, %v2092_v0  ;;  %2010 = vmatprep.mubr.msk.f32.mxu1 %vm2093_vm1, %v2092_v0 }
  0x1c   :  { %2013 = vmatprep.subr.mxu0 %v2092_v0  ;;  %2018 = vmatprep.subr.mxu1 %v2092_v0 }
  0x1d   :  { %2006 = vmatmul.mubr.msk.f32.vlgmr.msra.gmra.mrb[12].mxu0 %vm70_vm0, %v50_v27  ;;  %2011 = vmatmul.mubr.msk.f32.vlgmr.msra.gmra.mrb[12].mxu1 %vm70_vm0, %v51_v28 }
  0x1e   :  { %2014 = vmatpush3.xpose.msk.msra.mxu0 %vm70_vm0, %v68_v29  ;;  %2019 = vmatpush3.xpose.msk.msra.mxu1 %vm70_vm0, %v69_v30  ;;  %v1903_v29 = vld [vmem:[%s2844_s3 + $0x8] ss:$0 sm:$0xff]  ;;  %v1904_v30 = vld [vmem:[%s2844_s3 + $0x9] ss:$0 sm:$0xff] }
  0x1f   :  { %2015 = vmatprep.mubr.msk.f32.mxu0 %vm2093_vm1, %v2092_v0  ;;  %2020 = vmatprep.mubr.msk.f32.mxu1 %vm2093_vm1, %v2092_v0 }
  0x20   :  { %2026 = vset.pattern.permute.xlu0 %v2094_v35  ;;  %2027 = vset.pattern.permute.xlu1 %v2094_v35 }
  0x21   :  { %2016 = vmatmul.mubr.msk.f32.vlgmr.msra.gmra.mrb[14].mxu0 %vm70_vm0, %v52_v31  ;;  %2021 = vmatmul.mubr.msk.f32.vlgmr.msra.gmra.mrb[14].mxu1 %vm70_vm0, %v53_v32  ;;  %v1905_v31 = vld [vmem:[%s2844_s3 + $0xa] ss:$0 sm:$0xff]  ;;  %v1906_v32 = vld [vmem:[%s2844_s3 + $0xb] ss:$0 sm:$0xff] }
  0x22   :  { %1321 = vperm.xlu0 %2026, %v1287_v33   ;;  %1331 = vperm.xlu1 %2027, %v1289_v34   ;;  %v1907_v33 = vld [vmem:[%s2844_s3 + $0xc] ss:$0 sm:$0xff]  ;;  %v1909_v34 = vld [vmem:[%s2844_s3 + $0xe] ss:$0 sm:$0xff] }
  0x26   :  { %1326 = vperm.xlu0 %2026, %v1288_v36   ;;  %1336 = vperm.xlu1 %2027, %v1290_v37  }
  0x2a   :  { %1341 = vperm.xlu0 %2026, %v1291_v38   ;;  %1346 = vperm.xlu1 %2027, %v1292_v39   ;;  %v2473_v38 = vshrl.u32 %v1735_v11, 7 }
  0x2e   :  { %1351 = vperm.xlu0 %2026, %v1293_v40   ;;  %1356 = vperm.xlu1 %2027, %v1294_v41   ;;  %v1908_v41 = vld [vmem:[%s2844_s3 + $0xd] ss:$0 sm:$0xff] }
  0x32   :  { %1361 = vperm.xlu0 %2026, %v1295_v42   ;;  %1366 = vperm.xlu1 %2027, %v1296_v43  }
  0x36   :  { %1371 = vperm.xlu0 %2026, %v1297_v44   ;;  %1376 = vperm.xlu1 %2027, %v1298_v45   ;;  %v2479_v44 = vand.u32 127, %v1735_v11 }
  0x3a   :  { %1381 = vperm.xlu0 %2026, %v1299_v46   ;;  %1386 = vperm.xlu1 %2027, %v1300_v47  }
  0x3e   :  { %1391 = vperm.xlu0 %2026, %v1301_v48   ;;  %1396 = vperm.xlu1 %2027, %v1302_v49  }
  0xa1   :  { %v1322_v50 = vpop.permute.xlu0 %1321  ;;  %v1332_v51 = vpop.permute.xlu1 %1331 }
  0xa2   :  { %v1495_v0 = vadd.f32 %v1895_v61, %v1322_v50  ;;  %v1497_v12 = vadd.f32 %v1897_v3, %v1332_v51  ;;  %v1910_v61 = vld [vmem:[%s2844_s3 + $0xf] ss:$0 sm:$0xff] }
  0xa5   :  { %v1327_v52 = vpop.permute.xlu0 %1326  ;;  %v1337_v53 = vpop.permute.xlu1 %1336 }
  0xa6   :  { %v1496_v1 = vadd.f32 %v1896_v62, %v1327_v52  ;;  %v1498_v13 = vadd.f32 %v1898_v4, %v1337_v53 }
  0xa9   :  { %v1342_v54 = vpop.permute.xlu0 %1341  ;;  %v1347_v55 = vpop.permute.xlu1 %1346 }
  0xaa   :  { %v1499_v39 = vadd.f32 %v1899_v17, %v1342_v54  ;;  %v1500_v40 = vadd.f32 %v1900_v18, %v1347_v55 }
  0xad   :  { %v1352_v56 = vpop.permute.xlu0 %1351  ;;  %v1357_v57 = vpop.permute.xlu1 %1356 }
  0xae   :  { %v1501_v51 = vadd.f32 %v1901_v21, %v1352_v56  ;;  %v1502_v52 = vadd.f32 %v1902_v22, %v1357_v57 }
  0xb1   :  { %v1362_v58 = vpop.permute.xlu0 %1361  ;;  %v1367_v59 = vpop.permute.xlu1 %1366 }
  0xb2   :  { %v1503_v53 = vadd.f32 %v1903_v29, %v1362_v58  ;;  %v1504_v54 = vadd.f32 %v1904_v30, %v1367_v59 }
  0xb5   :  { %v1372_v60 = vpop.permute.xlu0 %1371  ;;  %v2430_v63 = vpop.permute.xlu1 %1376 }
  0xb6   :  { %v2485_v55 = vadd.f32 %v1905_v31, %v1372_v60  ;;  %v2492_v3 = vadd.f32 %v1906_v32, %v2430_v63 }
  0xb9   :  { %v1382_v2 = vpop.permute.xlu0 %1381  ;;  %v1387_v16 = vpop.permute.xlu1 %1386 }
  0xba   :  { %v2494_v4 = vadd.f32 %v1907_v33, %v1382_v2  ;;  %v2496_v56 = vadd.f32 %v1908_v41, %v1387_v16 }
  0xbd   :  { %v1392_v35 = vpop.permute.xlu0 %1391  ;;  %v1397_v62 = vpop.permute.xlu1 %1396 }
  0xbe   :  { %v2498_v57 = vadd.f32 %v1909_v34, %v1392_v35 }
  0xd8   :  { %v143_v5 = vpop.f32.mrb[0].mxu0  ;;  %v219_v6 = vpop.f32.mrb[0].mxu1 }
  0xd9   :  { %v1511_v7 = vmul.f32 2.0, %v143_v5  ;;  %v1512_v8 = vmul.f32 2.0, %v219_v6  ;;  %v1947_v9 = vpop.f32.mrb[1].mxu0  ;;  %v1952_v10 = vpop.f32.mrb[1].mxu1 }
  0xda   :  { %v2503_v9 = vadd.f32 %v1910_v61, %v1397_v62 }
  0xdb   :  { %v1527_v14 = vsub.f32 %v1495_v0, %v1511_v7  ;;  %v1528_v15 = vsub.f32 %v1496_v1, %v1512_v8 }
  0xdc   :  { %v295_v19 = vpop.f32.mrb[2].mxu0  ;;  %v371_v20 = vpop.f32.mrb[2].mxu1 }
  0xdd   :  { %v2450_v23 = vmax.f32 %v1527_v14, 0.0  ;;  %v2452_v24 = vmax.f32 %v1528_v15, 0.0  ;;  %v1513_v25 = vmul.f32 2.0, %v295_v19  ;;  %v1514_v26 = vmul.f32 2.0, %v371_v20  ;;  %v1957_v27 = vpop.f32.mrb[3].mxu0  ;;  %v1962_v28 = vpop.f32.mrb[3].mxu1 }
  0xdf   :  { %2028 = vrsqrt.f32 %v2450_v23  ;;  %v1529_v36 = vsub.f32 %v1497_v12, %v1513_v25  ;;  %v1530_v37 = vsub.f32 %v1498_v13, %v1514_v26  ;;  %vm1568_vm3 = vcmp.eq.f32.partialorder %v2452_v24, inf }
  0xe0   :  { %2030 = vrsqrt.f32 %v2452_v24  ;;  %v447_v42 = vpop.f32.mrb[4].mxu0  ;;  %v523_v43 = vpop.f32.mrb[4].mxu1  ;;  %vm1570_vm4 = vcmp.eq.f32.partialorder %v2452_v24, 0.0  ;;  %v1571_v11 = vand.u32 2147483648, %v2452_v24  ;;  %vm1561_vm5 = vcmp.eq.f32.partialorder %v2450_v23, inf }
  0xe1   :  { %v2481_v45 = vmax.f32 %v1529_v36, 0.0  ;;  %v2483_v46 = vmax.f32 %v1530_v37, 0.0  ;;  %v1515_v47 = vmul.f32 2.0, %v447_v42  ;;  %v1516_v48 = vmul.f32 2.0, %v523_v43  ;;  %v1967_v49 = vpop.f32.mrb[5].mxu0  ;;  %v1972_v50 = vpop.f32.mrb[5].mxu1 }
  0xe2   :  { %vm1563_vm6 = vcmp.eq.f32.partialorder %v2450_v23, 0.0  ;;  %v1564_v14 = vand.u32 2147483648, %v2450_v23 }
  0xe3   :  { %2032 = vrsqrt.f32 %v2481_v45  ;;  %v1531_v0 = vsub.f32 %v1499_v39, %v1515_v47  ;;  %v1532_v1 = vsub.f32 %v1500_v40, %v1516_v48  ;;  %vm1575_vm7 = vcmp.eq.f32.partialorder %v2481_v45, inf }
  0xe4   :  { %v599_v58 = vpop.f32.mrb[6].mxu0  ;;  %v675_v59 = vpop.f32.mrb[6].mxu1  ;;  %2034 = vrsqrt.f32 %v2483_v46  ;;  %vm1577_vm8 = vcmp.eq.f32.partialorder %v2481_v45, 0.0  ;;  %v1578_v26 = vand.u32 2147483648, %v2481_v45  ;;  %v1585_v27 = vand.u32 2147483648, %v2483_v46 }
  0xe5   :  { %v2501_v60 = vmax.f32 %v1531_v0, 0.0  ;;  %v1517_v5 = vmul.f32 2.0, %v599_v58  ;;  %v1518_v6 = vmul.f32 2.0, %v675_v59  ;;  %v1977_v7 = vpop.f32.mrb[7].mxu0  ;;  %v1982_v8 = vpop.f32.mrb[7].mxu1  ;;  %v2505_v63 = vmax.f32 %v1532_v1, 0.0 }
  0xe6   :  { %vm1582_vm9 = vcmp.eq.f32.partialorder %v2483_v46, inf  ;;  %vm1584_vm10 = vcmp.eq.f32.partialorder %v2483_v46, 0.0 }
  0xe7   :  { %v1533_v2 = vsub.f32 %v1501_v51, %v1517_v5  ;;  %v1534_v10 = vsub.f32 %v1502_v52, %v1518_v6  ;;  %2036 = vrsqrt.f32 %v2501_v60  ;;  %v1592_v34 = vand.u32 2147483648, %v2501_v60 }
  0xe8   :  { %v751_v12 = vpop.f32.mrb[8].mxu0  ;;  %v827_v13 = vpop.f32.mrb[8].mxu1  ;;  %2038 = vrsqrt.f32 %v2505_v63  ;;  %v1599_v35 = vand.u32 2147483648, %v2505_v63  ;;  %vm1589_vm11 = vcmp.eq.f32.partialorder %v2501_v60, inf  ;;  %vm1591_vm12 = vcmp.eq.f32.partialorder %v2501_v60, 0.0 }
  0xe9   :  { %v2029_v15 = vpop.eup %2028  ;;  %v2515_v16 = vmax.f32 %v1533_v2, 0.0  ;;  %v2517_v17 = vmax.f32 %v1534_v10, 0.0  ;;  %v1519_v18 = vmul.f32 2.0, %v751_v12  ;;  %v1520_v19 = vmul.f32 2.0, %v827_v13  ;;  %v1987_v20 = vpop.f32.mrb[9].mxu0 }
  0xea   :  { %v1992_v21 = vpop.f32.mrb[9].mxu1  ;;  %v2031_v22 = vpop.eup %2030  ;;  %v1560_v25 = vmul.f32 %v2029_v15, %v2450_v23  ;;  %vm1596_vm13 = vcmp.eq.f32.partialorder %v2505_v63, inf  ;;  %vm1598_vm14 = vcmp.eq.f32.partialorder %v2505_v63, 0.0 }
  0xeb   :  { %2040 = vrsqrt.f32 %v2515_v16  ;;  %v1535_v28 = vsub.f32 %v1503_v53, %v1519_v18  ;;  %v1536_v29 = vsub.f32 %v1504_v54, %v1520_v19  ;;  %v1567_v30 = vmul.f32 %v2031_v22, %v2452_v24 }
  0xec   :  { %2042 = vrsqrt.f32 %v2517_v17  ;;  %v903_v31 = vpop.f32.mrb[10].mxu0  ;;  %v979_v32 = vpop.f32.mrb[10].mxu1  ;;  %v1562_v33 = vsel %vm1561_vm5, %v2450_v23, %v1560_v25  ;;  %v1606_v50 = vand.u32 2147483648, %v2515_v16  ;;  %vm1603_vm15 = vcmp.eq.f32.partialorder %v2515_v16, inf }
  0xed   :  { %v2033_v36 = vpop.eup %2032  ;;  %v2533_v37 = vmax.f32 %v1535_v28, 0.0  ;;  %v2535_v39 = vmax.f32 %v1536_v29, 0.0  ;;  %v1521_v40 = vmul.f32 2.0, %v903_v31  ;;  %v1522_v41 = vmul.f32 2.0, %v979_v32  ;;  %v1997_v42 = vpop.f32.mrb[11].mxu0 }
  0xee   :  { %v2002_v43 = vpop.f32.mrb[11].mxu1  ;;  %v1569_v47 = vsel %vm1568_vm3, %v2452_v24, %v1567_v30  ;;  %v1565_v48 = vsel %vm1563_vm6, %v1564_v14, %v1562_v33  ;;  %v1574_v49 = vmul.f32 %v2033_v36, %v2481_v45  ;;  %v2035_v51 = vpop.eup %2034  ;;  %vm1605_vm1 = vcmp.eq.f32.partialorder %v2515_v16, 0.0 }
  0xef   :  { %2044 = vrsqrt.f32 %v2533_v37  ;;  %v1537_v52 = vsub.f32 %v2485_v55, %v1521_v40  ;;  %v1538_v53 = vsub.f32 %v2492_v3, %v1522_v41  ;;  %v1572_v54 = vsel %vm1570_vm4, %v1571_v11, %v1569_v47 }
  0xf0   :  { %2046 = vrsqrt.f32 %v2535_v39  ;;  %v1055_v23 = vpop.f32.mrb[12].mxu0  ;;  %v1131_v61 = vpop.f32.mrb[12].mxu1  ;;  %v1672_v62 = vmin.f32 %v1572_v54, 10.0  ;;  %v1671_v0 = vmin.f32 %v1565_v48, 10.0  ;;  %v1576_v1 = vsel %vm1575_vm7, %v2481_v45, %v1574_v49 }
  0xf1   :  { %v2555_v58 = vmax.f32 %v1537_v52, 0.0  ;;  %v2557_v55 = vmax.f32 %v1538_v53, 0.0  ;;  %v1523_v3 = vmul.f32 2.0, %v1055_v23  ;;  %v1524_v59 = vmul.f32 2.0, %v1131_v61  ;;  %v2007_v24 = vpop.f32.mrb[13].mxu0  ;;  %v2012_v5 = vpop.f32.mrb[13].mxu1 }
  0xf2   :  { %v2037_v6 = vpop.eup %2036  ;;  %v1688_v7 = vsub.f32 0.0, %v1672_v62  ;;  %v1687_v8 = vsub.f32 0.0, %v1671_v0  ;;  %v1579_v2 = vsel %vm1577_vm8, %v1578_v26, %v1576_v1  ;;  %v1581_v10 = vmul.f32 %v2035_v51, %v2483_v46 }
  0xf3   :  { %2048 = vrsqrt.f32 %v2555_v58  ;;  %v1539_v11 = vsub.f32 %v2494_v4, %v1523_v3  ;;  %v1540_v12 = vsub.f32 %v2496_v56, %v1524_v59  ;;  %v1673_v13 = vmin.f32 %v1579_v2, 10.0  ;;  %v2039_v14 = vpop.eup %2038 }
  0xf4   :  { %2050 = vrsqrt.f32 %v2557_v55  ;;  %v1207_v15 = vpop.f32.mrb[14].mxu0  ;;  %v1283_v18 = vpop.f32.mrb[14].mxu1  ;;  %v1705_v45 = vmul.f32 1.442695, %v1688_v7  ;;  %v1703_v19 = vmul.f32 1.442695, %v1687_v8  ;;  %v1583_v20 = vsel %vm1582_vm9, %v2483_v46, %v1581_v10 }
  0xf5   :  { %v2041_v21 = vpop.eup %2040  ;;  %v2574_v4 = vmax.f32 %v1539_v11, 0.0  ;;  %v2576_v56 = vmax.f32 %v1540_v12, 0.0  ;;  %v1525_v22 = vmul.f32 2.0, %v1207_v15  ;;  %v1526_v25 = vmul.f32 2.0, %v1283_v18  ;;  %v2017_v26 = vpop.f32.mrb[15].mxu0 }
  0xf6   :  { %v2022_v28 = vpop.f32.mrb[15].mxu1  ;;  %v2043_v29 = vpop.eup %2042  ;;  %2052 = vpow2.f32 %v1705_v45  ;;  %vm2580_vm3 = vcmp.eq.s32.totalorder %v2473_v38, %v2479_v44  ;;  %v1689_v31 = vsub.f32 0.0, %v1673_v13  ;;  %v1586_v32 = vsel %vm1584_vm10, %v1585_v27, %v1583_v20 }
  0xf7   :  { %v1588_v33 = vmul.f32 %v2037_v6, %v2501_v60  ;;  %2054 = vrsqrt.f32 %v2574_v4  ;;  %v1541_v36 = vsub.f32 %v2498_v57, %v1525_v22  ;;  %v1542_v40 = vsub.f32 %v2503_v9, %v1526_v25 }
  0xf8   :  { %v1674_v41 = vmin.f32 %v1586_v32, 10.0  ;;  %2056 = vrsqrt.f32 %v2576_v56  ;;  %v1707_v38 = vmul.f32 1.442695, %v1689_v31  ;;  %v1595_v42 = vmul.f32 %v2039_v14, %v2505_v63 }
  0xf9   :  { %v1590_v44 = vsel %vm1589_vm11, %v2501_v60, %v1588_v33  ;;  %v2045_v46 = vpop.eup %2044  ;;  %v2597_v27 = vmax.f32 %v1541_v36, 0.0  ;;  %v2599_v43 = vmax.f32 %v1542_v40, 0.0  ;;  %2058 = vpow2.f32 %v1703_v19 }
  0xfa   :  { %v1690_v47 = vsub.f32 0.0, %v1674_v41  ;;  %v2047_v57 = vpop.eup %2046  ;;  %2060 = vpow2.f32 %v1707_v38  ;;  %v1593_v9 = vsel %vm1591_vm12, %v1592_v34, %v1590_v44  ;;  %v1597_v48 = vsel %vm1596_vm13, %v2505_v63, %v1595_v42 }
  0xfb   :  { %v1602_v49 = vmul.f32 %v2041_v21, %v2515_v16  ;;  %2062 = vrsqrt.f32 %v2597_v27  ;;  %v1675_v52 = vmin.f32 %v1593_v9, 10.0  ;;  %v1600_v53 = vsel %vm1598_vm14, %v1599_v35, %v1597_v48 }
  0xfc   :  { %v1709_v51 = vmul.f32 1.442695, %v1690_v47  ;;  %2064 = vrsqrt.f32 %v2599_v43  ;;  %v1676_v54 = vmin.f32 %v1600_v53, 10.0  ;;  %v1609_v34 = vmul.f32 %v2043_v29, %v2517_v17 }
  0xfd   :  { %v1604_v60 = vsel %vm1603_vm15, %v2515_v16, %v1602_v49  ;;  %v2049_v23 = vpop.eup %2048  ;;  %v1691_v61 = vsub.f32 0.0, %v1675_v52  ;;  %vm1610_vm4 = vcmp.eq.f32.partialorder %v2517_v17, inf  ;;  %vm1612_vm5 = vcmp.eq.f32.partialorder %v2517_v17, 0.0 }
  0xfe   :  { %2066 = vpow2.f32 %v1709_v51  ;;  %v1607_v62 = vsel %vm1605_vm1, %v1606_v50, %v1604_v60  ;;  %v2051_v63 = vpop.eup %2050  ;;  %v1692_v35 = vsub.f32 0.0, %v1676_v54  ;;  %v1611_v1 = vsel %vm1610_vm4, %v2517_v17, %v1609_v34 }
  0xff   :  { %v1677_v0 = vmin.f32 %v1607_v62, 10.0  ;;  %v1711_v3 = vmul.f32 1.442695, %v1691_v61  ;;  %v1613_v59 = vand.u32 2147483648, %v2517_v17  ;;  %v1616_v24 = vmul.f32 %v2045_v46, %v2533_v37 }
 0x100   :  { %vm1617_vm6 = vcmp.eq.f32.partialorder %v2533_v37, inf  ;;  %v2053_v5 = vpop.eup %2052  ;;  %v1713_v6 = vmul.f32 1.442695, %v1692_v35  ;;  %vm1619_vm7 = vcmp.eq.f32.partialorder %v2533_v37, 0.0  ;;  %v1620_v50 = vand.u32 2147483648, %v2533_v37 }
 0x101   :  { %v1693_v16 = vsub.f32 0.0, %v1677_v0  ;;  %v2055_v7 = vpop.eup %2054  ;;  %v1747_v8 = vsel %vm2580_vm3, 1.0, %v2053_v5  ;;  %2068 = vpow2.f32 %v1711_v3  ;;  %v1614_v2 = vsel %vm1612_vm5, %v1613_v59, %v1611_v1 }
 0x102   :  { %v1618_v10 = vsel %vm1617_vm6, %v2533_v37, %v1616_v24  ;;  %v2634_v17 = vpop.eup %2056  ;;  %v1781_v11 = vsel %vm70_vm0, %v1747_v8, 0.0  ;;  %2070 = vpow2.f32 %v1713_v6  ;;  %v1678_v13 = vmin.f32 %v1614_v2, 10.0 }
 0x103   :  { %v1715_v12 = vmul.f32 1.442695, %v1693_v16  ;;  %v2059_v14 = vpop.eup %2058  ;;  %1782 = vadd.xlane.f32.xlu1 %v1781_v11  ;;  %v1621_v15 = vsel %vm1619_vm7, %v1620_v50, %v1618_v10  ;;  %v1623_v18 = vmul.f32 %v2047_v57, %v2535_v39  ;;  %vm1624_vm8 = vcmp.eq.f32.partialorder %v2535_v39, inf }
 0x104   :  { %vm1626_vm9 = vcmp.eq.f32.partialorder %v2535_v39, 0.0  ;;  %v2061_v45 = vpop.eup %2060  ;;  %v1746_v37 = vsel %vm2580_vm3, 1.0, %v2059_v14  ;;  %v1694_v19 = vsub.f32 0.0, %v1678_v13  ;;  %v1679_v20 = vmin.f32 %v1621_v15, 10.0 }
 0x105   :  { %2072 = vpow2.f32 %v1715_v12  ;;  %v2642_v21 = vpop.eup %2062  ;;  %v1778_v22 = vsel %vm70_vm0, %v1746_v37, 0.0  ;;  %v1748_v25 = vsel %vm2580_vm3, 1.0, %v2061_v45  ;;  %v1625_v26 = vsel %vm1624_vm8, %v2535_v39, %v1623_v18 }
 0x106   :  { %v1627_v28 = vand.u32 2147483648, %v2535_v39  ;;  %v2649_v29 = vpop.eup %2064  ;;  %1779 = vadd.xlane.f32.xlu0 %v1778_v22  ;;  %v1784_v31 = vsel %vm70_vm0, %v1748_v25, 0.0  ;;  %v1717_v32 = vmul.f32 1.442695, %v1694_v19  ;;  %v1695_v33 = vsub.f32 0.0, %v1679_v20 }
 0x107   :  { %v1630_v36 = vmul.f32 %v2049_v23, %v2555_v58  ;;  %vm1631_vm10 = vcmp.eq.f32.partialorder %v2555_v58, inf  ;;  %vm1633_vm11 = vcmp.eq.f32.partialorder %v2555_v58, 0.0  ;;  %v1634_v38 = vand.u32 2147483648, %v2555_v58 }
 0x108   :  { %v2067_v40 = vpop.eup %2066  ;;  %v1628_v41 = vsel %vm1626_vm9, %v1627_v28, %v1625_v26  ;;  %2074 = vpow2.f32 %v1717_v32  ;;  %v1719_v42 = vmul.f32 1.442695, %v1695_v33  ;;  %v1637_v9 = vmul.f32 %v2051_v63, %v2557_v55 }
 0x109   :  { %v1749_v44 = vsel %vm2580_vm3, 1.0, %v2067_v40  ;;  %v1680_v46 = vmin.f32 %v1628_v41, 10.0  ;;  %v1632_v57 = vsel %vm1631_vm10, %v2555_v58, %v1630_v36  ;;  %vm1638_vm12 = vcmp.eq.f32.partialorder %v2557_v55, inf }
 0x10a   :  { %v1787_v47 = vsel %vm70_vm0, %v1749_v44, 0.0  ;;  %1785 = vadd.xlane.f32.xlu0 %v1784_v31  ;;  %2076 = vpow2.f32 %v1719_v42  ;;  %v1635_v48 = vsel %vm1633_vm11, %v1634_v38, %v1632_v57  ;;  %vm1640_vm13 = vcmp.eq.f32.partialorder %v2557_v55, 0.0 }
 0x10b   :  { %v1696_v39 = vsub.f32 0.0, %v1680_v46  ;;  %v2069_v49 = vpop.eup %2068  ;;  %v1681_v51 = vmin.f32 %v1635_v48, 10.0  ;;  %v1639_v52 = vsel %vm1638_vm12, %v2557_v55, %v1637_v9  ;;  %v1641_v53 = vand.u32 2147483648, %v2557_v55 }
 0x10c   :  { %v1644_v54 = vmul.f32 %v2055_v7, %v2574_v4  ;;  %v2071_v60 = vpop.eup %2070  ;;  %v1750_v58 = vsel %vm2580_vm3, 1.0, %v2069_v49  ;;  %vm1645_vm14 = vcmp.eq.f32.partialorder %v2574_v4, inf  ;;  %vm1647_vm15 = vcmp.eq.f32.partialorder %v2574_v4, 0.0 }
 0x10d   :  { %v1721_v34 = vmul.f32 1.442695, %v1696_v39  ;;  %v1790_v23 = vsel %vm70_vm0, %v1750_v58, 0.0  ;;  %v1751_v61 = vsel %vm2580_vm3, 1.0, %v2071_v60  ;;  %v1697_v62 = vsub.f32 0.0, %v1681_v51 }
 0x10e   :  { %v1642_v63 = vsel %vm1640_vm13, %v1641_v53, %v1639_v52  ;;  %1788 = vadd.xlane.f32.xlu0 %v1787_v47  ;;  %1791 = vadd.xlane.f32.xlu1 %v1790_v23  ;;  %v1793_v55 = vsel %vm70_vm0, %v1751_v61, 0.0  ;;  %v1646_v1 = vsel %vm1645_vm14, %v2574_v4, %v1644_v54  ;;  %v1648_v24 = vand.u32 2147483648, %v2574_v4 }
 0x10f   :  { %v2073_v35 = vpop.eup %2072  ;;  %2078 = vpow2.f32 %v1721_v34  ;;  %v1682_v0 = vmin.f32 %v1642_v63, 10.0  ;;  %v1723_v59 = vmul.f32 1.442695, %v1697_v62  ;;  %v1651_v5 = vmul.f32 %v2634_v17, %v2576_v56  ;;  %v1763_v63 = vld [vmem:[%s2843_s4 + $0x8] sm:$0xff] }
 0x110   :  { %v1752_v3 = vsel %vm2580_vm3, 1.0, %v2073_v35  ;;  %vm1652_vm1 = vcmp.eq.f32.partialorder %v2576_v56, inf  ;;  %vm1654_vm4 = vcmp.eq.f32.partialorder %v2576_v56, 0.0  ;;  %v1649_v50 = vsel %vm1647_vm15, %v1648_v24, %v1646_v1 }
 0x111   :  { %v1796_v6 = vsel %vm70_vm0, %v1752_v3, 0.0  ;;  %v1698_v16 = vsub.f32 0.0, %v1682_v0  ;;  %2080 = vpow2.f32 %v1723_v59  ;;  %v1653_v7 = vsel %vm1652_vm1, %v2576_v56, %v1651_v5  ;;  %v1762_v0 = vld [vmem:[%s2843_s4] sm:$0xff]  ;;  %v1764_v3 = vld [vmem:[%s2843_s4 + $0x10] sm:$0xff]  ;;  %v1765_v5 = vld [vmem:[%s2843_s4 + $0x18] sm:$0xff] }
 0x112   :  { %v1655_v8 = vand.u32 2147483648, %v2576_v56  ;;  %v2075_v2 = vpop.eup %2074  ;;  %1794 = vadd.xlane.f32.xlu0 %v1793_v55  ;;  %1797 = vadd.xlane.f32.xlu1 %v1796_v6  ;;  %v1683_v17 = vmin.f32 %v1649_v50, 10.0  ;;  %v1658_v11 = vmul.f32 %v2642_v21, %v2597_v27  ;;  %vm1659_vm5 = vcmp.eq.f32.partialorder %v2597_v27, inf  ;;  %v1766_v6 = vld [vmem:[%s2843_s4 + $0x20] sm:$0xff] }
 0x113   :  { %v1725_v10 = vmul.f32 1.442695, %v1698_v16  ;;  %v1753_v12 = vsel %vm2580_vm3, 1.0, %v2075_v2  ;;  %vm1661_vm6 = vcmp.eq.f32.partialorder %v2597_v27, 0.0  ;;  %v1662_v4 = vand.u32 2147483648, %v2597_v27  ;;  %v1767_v2 = vld [vmem:[%s2843_s4 + $0x28] sm:$0xff] }
 0x114   :  { %v1656_v13 = vsel %vm1654_vm4, %v1655_v8, %v1653_v7  ;;  %v2077_v14 = vpop.eup %2076  ;;  %v1799_v56 = vsel %vm70_vm0, %v1753_v12, 0.0  ;;  %v1699_v15 = vsub.f32 0.0, %v1683_v17  ;;  %v1660_v37 = vsel %vm1659_vm5, %v2597_v27, %v1658_v11 }
 0x115   :  { %2082 = vpow2.f32 %v1725_v10  ;;  %v1684_v18 = vmin.f32 %v1656_v13, 10.0  ;;  %v1754_v45 = vsel %vm2580_vm3, 1.0, %v2077_v14  ;;  %v1665_v19 = vmul.f32 %v2649_v29, %v2599_v43  ;;  %v1768_v10 = vld [vmem:[%s2843_s4 + $0x30] sm:$0xff]  ;;  %v1770_v14 = vld [vmem:[%s2843_s4 + $0x40] sm:$0xff] }
 0x116   :  { %vm1666_vm7 = vcmp.eq.f32.partialorder %v2599_v43, inf  ;;  %1800 = vadd.xlane.f32.xlu0 %v1799_v56  ;;  %v1802_v20 = vsel %vm70_vm0, %v1754_v45, 0.0  ;;  %v1727_v21 = vmul.f32 1.442695, %v1699_v15  ;;  %v1663_v25 = vsel %vm1661_vm6, %v1662_v4, %v1660_v37  ;;  %v1769_v4 = vld [vmem:[%s2843_s4 + $0x38] sm:$0xff]  ;;  %v1771_v37 = vld [vmem:[%s2843_s4 + $0x48] sm:$0xff] }
 0x117   :  { %v1700_v22 = vsub.f32 0.0, %v1684_v18  ;;  %1803 = vadd.xlane.f32.xlu1 %v1802_v20  ;;  %v1685_v26 = vmin.f32 %v1663_v25, 10.0  ;;  %v1667_v28 = vsel %vm1666_vm7, %v2599_v43, %v1665_v19  ;;  %v1669_v31 = vand.u32 2147483648, %v2599_v43 }
 0x118   :  { %2084 = vpow2.f32 %v1727_v21  ;;  %vm1668_vm8 = vcmp.eq.f32.partialorder %v2599_v43, 0.0  ;;  %v1772_v21 = vld [vmem:[%s2843_s4 + $0x50] sm:$0xff] }
 0x119   :  { %v2079_v32 = vpop.eup %2078  ;;  %v1729_v27 = vmul.f32 1.442695, %v1700_v22  ;;  %v1701_v33 = vsub.f32 0.0, %v1685_v26  ;;  %v1670_v36 = vsel %vm1668_vm8, %v1669_v31, %v1667_v28  ;;  %v1773_v26 = vld [vmem:[%s2843_s4 + $0x58] sm:$0xff] }
 0x11a   :  { %v1755_v29 = vsel %vm2580_vm3, 1.0, %v2079_v32  ;;  %v1686_v41 = vmin.f32 %v1670_v36, 10.0  ;;  %v1774_v32 = vld [vmem:[%s2843_s4 + $0x60] sm:$0xff] }
 0x11b   :  { %v1805_v40 = vsel %vm70_vm0, %v1755_v29, 0.0  ;;  %2086 = vpow2.f32 %v1729_v27  ;;  %v2081_v38 = vpop.eup %2080  ;;  %v1731_v44 = vmul.f32 1.442695, %v1701_v33  ;;  %v1775_v29 = vld [vmem:[%s2843_s4 + $0x68] sm:$0xff] }
 0x11c   :  { %1806 = vadd.xlane.f32.xlu0 %v1805_v40  ;;  %v1756_v42 = vsel %vm2580_vm3, 1.0, %v2081_v38  ;;  %v1702_v46 = vsub.f32 0.0, %v1686_v41  ;;  %v1776_v41 = vld [vmem:[%s2843_s4 + $0x70] sm:$0xff] }
 0x11d   :  { %v1808_v47 = vsel %vm70_vm0, %v1756_v42, 0.0  ;;  %2088 = vpow2.f32 %v1731_v44  ;;  %v1777_v42 = vld [vmem:[%s2843_s4 + $0x78] sm:$0xff] }
 0x11e   :  { %1809 = vadd.xlane.f32.xlu1 %v1808_v47  ;;  %v1733_v57 = vmul.f32 1.442695, %v1702_v46 }
 0x11f   :  { %v2083_v43 = vpop.eup %2082 }
 0x120   :  { %v1757_v9 = vsel %vm2580_vm3, 1.0, %v2083_v43  ;;  %2090 = vpow2.f32 %v1733_v57 }
 0x121   :  { %v1811_v39 = vsel %vm70_vm0, %v1757_v9, 0.0 }
 0x122   :  { %1812 = vadd.xlane.f32.xlu0 %v1811_v39  ;;  %v2085_v48 = vpop.eup %2084 }
 0x123   :  { %v1758_v49 = vsel %vm2580_vm3, 1.0, %v2085_v48 }
 0x124   :  { %v1814_v52 = vsel %vm70_vm0, %v1758_v49, 0.0 }
 0x125   :  { %v2087_v51 = vpop.eup %2086  ;;  %1815 = vadd.xlane.f32.xlu1 %v1814_v52 }
 0x126   :  { %v1759_v53 = vsel %vm2580_vm3, 1.0, %v2087_v51 }
 0x127   :  { %v1817_v54 = vsel %vm70_vm0, %v1759_v53, 0.0  ;;  %v2089_v60 = vpop.eup %2088 }
 0x128   :  { %1818 = vadd.xlane.f32.xlu0 %v1817_v54  ;;  %v1760_v58 = vsel %vm2580_vm3, 1.0, %v2089_v60 }
 0x129   :  { %v1820_v34 = vsel %vm70_vm0, %v1760_v58, 0.0 }
 0x12a   :  { %v2091_v23 = vpop.eup %2090  ;;  %1821 = vadd.xlane.f32.xlu1 %v1820_v34 }
 0x12b   :  { %v1761_v61 = vsel %vm2580_vm3, 1.0, %v2091_v23 }
 0x12c   :  { %v1823_v62 = vsel %vm70_vm0, %v1761_v61, 0.0 }
 0x12d   :  { %1824 = vadd.xlane.f32.xlu0 %v1823_v62 }
 0x190   :  { %v1783_v35 = vpop.xlane.xlu1 %1782 }
 0x191   :  { %v1827_v55 = vadd.f32 %v1783_v35, %v1763_v63 }
 0x193   :  { %1844 = vst.msk [vmem:[%s2843_s4 + $0x8] sm:$0xff] %vm21_vm2, %v1827_v55  ;;  %v1780_v30 = vpop.xlane.xlu0 %1779 }
 0x194   :  { %v1826_v1 = vadd.f32 %v1780_v30, %v1762_v0 }
 0x196   :  { %1843 = vst.msk [vmem:[%s2843_s4] sm:$0xff] %vm21_vm2, %v1826_v1 }
 0x197   :  { %v1786_v59 = vpop.xlane.xlu0 %1785 }
 0x198   :  { %v1828_v24 = vadd.f32 %v1786_v59, %v1764_v3 }
 0x19a   :  { %1845 = vst.msk [vmem:[%s2843_s4 + $0x10] sm:$0xff] %vm21_vm2, %v1828_v24 }
 0x19b   :  { %v1789_v16 = vpop.xlane.xlu0 %1788  ;;  %v1792_v50 = vpop.xlane.xlu1 %1791 }
 0x19c   :  { %v1829_v7 = vadd.f32 %v1789_v16, %v1765_v5  ;;  %v1830_v8 = vadd.f32 %v1792_v50, %v1766_v6 }
 0x19e   :  { %1846 = vst.msk [vmem:[%s2843_s4 + $0x18] sm:$0xff] %vm21_vm2, %v1829_v7  ;;  %1847 = vst.msk [vmem:[%s2843_s4 + $0x20] sm:$0xff] %vm21_vm2, %v1830_v8 }
 0x19f   :  { %v1795_v17 = vpop.xlane.xlu0 %1794  ;;  %v1798_v11 = vpop.xlane.xlu1 %1797 }
 0x1a0   :  { %v1831_v12 = vadd.f32 %v1795_v17, %v1767_v2  ;;  %v1832_v13 = vadd.f32 %v1798_v11, %v1768_v10 }
 0x1a2   :  { %1848 = vst.msk [vmem:[%s2843_s4 + $0x28] sm:$0xff] %vm21_vm2, %v1831_v12  ;;  %1849 = vst.msk [vmem:[%s2843_s4 + $0x30] sm:$0xff] %vm21_vm2, %v1832_v13 }
 0x1a3   :  { %v1801_v56 = vpop.xlane.xlu0 %1800 }
 0x1a4   :  { %v1833_v15 = vadd.f32 %v1801_v56, %v1769_v4  ;;  %v1804_v18 = vpop.xlane.xlu1 %1803 }
 0x1a5   :  { %v1834_v45 = vadd.f32 %v1804_v18, %v1770_v14 }
 0x1a6   :  { %1850 = vst.msk [vmem:[%s2843_s4 + $0x38] sm:$0xff] %vm21_vm2, %v1833_v15 }
 0x1a7   :  { %1851 = vst.msk [vmem:[%s2843_s4 + $0x40] sm:$0xff] %vm21_vm2, %v1834_v45 }
 0x1a9   :  { %v1807_v19 = vpop.xlane.xlu0 %1806 }
 0x1aa   :  { %v1835_v20 = vadd.f32 %v1807_v19, %v1771_v37 }
 0x1ab   :  { %v1810_v22 = vpop.xlane.xlu1 %1809 }
 0x1ac   :  { %1852 = vst.msk [vmem:[%s2843_s4 + $0x48] sm:$0xff] %vm21_vm2, %v1835_v20  ;;  %v1836_v25 = vadd.f32 %v1810_v22, %v1772_v21 }
 0x1ae   :  { %1853 = vst.msk [vmem:[%s2843_s4 + $0x50] sm:$0xff] %vm21_vm2, %v1836_v25 }
 0x1af   :  { %v1813_v28 = vpop.xlane.xlu0 %1812 }
 0x1b0   :  { %v1837_v31 = vadd.f32 %v1813_v28, %v1773_v26 }
 0x1b2   :  { %1854 = vst.msk [vmem:[%s2843_s4 + $0x58] sm:$0xff] %vm21_vm2, %v1837_v31  ;;  %v1816_v27 = vpop.xlane.xlu1 %1815 }
 0x1b3   :  { %v1838_v33 = vadd.f32 %v1816_v27, %v1774_v32 }
 0x1b5   :  { %v1819_v36 = vpop.xlane.xlu0 %1818  ;;  %1855 = vst.msk [vmem:[%s2843_s4 + $0x60] sm:$0xff] %vm21_vm2, %v1838_v33 }
 0x1b6   :  { %v1839_v40 = vadd.f32 %v1819_v36, %v1775_v29 }
 0x1b7   :  { %v1822_v38 = vpop.xlane.xlu1 %1821 }
 0x1b8   :  { %1856 = vst.msk [vmem:[%s2843_s4 + $0x68] sm:$0xff] %vm21_vm2, %v1839_v40  ;;  %v1840_v44 = vadd.f32 %v1822_v38, %v1776_v41 }
 0x1ba   :  { %1857 = vst.msk [vmem:[%s2843_s4 + $0x70] sm:$0xff] %vm21_vm2, %v1840_v44  ;;  %v1825_v46 = vpop.xlane.xlu0 %1824 }
 0x1bb   :  { %v1841_v47 = vadd.f32 %v1825_v46, %v1777_v42 }
 0x1bd   :  { %1858 = vst.msk [vmem:[%s2843_s4 + $0x78] sm:$0xff] %vm21_vm2, %v1841_v47 }

</bundles_post_ra>
